<compile_context>
chip_gen: v6e
topology: v6e:2x2x1
jax: 0.10.0
libtpu: 0.0.40
codegen_flags: <defaults>
</compile_context>

<pallas_src>
import math

import jax
import jax.numpy as jnp
from jax import lax
from jax.experimental import pallas as pl
from jax.experimental.pallas import tpu as pltpu


def _round_up(x, m):
    return (x + m - 1) // m * m


def _mlp_kernel(x_ref, w1_ref, b1_ref, w2_ref, b2_ref, o_ref, acc_ref):
    # x_ref : (tm, Cin_p)    compute dtype (bf16)
    # w1_ref: (Cin_p, tk)    compute dtype
    # b1_ref: (1, tk)        f32
    # w2_ref: (tk, Cout_p)   compute dtype
    # b2_ref: (1, Cout_p)    f32
    # o_ref : (tm, Cout_p)   out dtype
    # acc_ref: (tm, Cout_p)  f32 VMEM accumulator, resident across the k axis
    k = pl.program_id(1)

    @pl.when(k == 0)
    def _init():
        acc_ref[...] = jnp.zeros_like(acc_ref)

    # fc1 (one hidden tile): bf16 x bf16 -> f32 accumulate on the MXU.
    h = jnp.dot(x_ref[...], w1_ref[...], preferred_element_type=jnp.float32)
    h = h + b1_ref[...]

    # Exact GELU (matches torch.nn.GELU default): 0.5*x*(1+erf(x/sqrt(2))).
    h = 0.5 * h * (1.0 + lax.erf(h * (1.0 / math.sqrt(2.0))))

    # Dropout with p=0.0 is identity (eval semantics) -> no-op.

    # fc2 partial product over this hidden tile; accumulate in f32.
    acc_ref[...] += jnp.dot(h.astype(w2_ref.dtype), w2_ref[...],
                            preferred_element_type=jnp.float32)

    @pl.when(k == pl.num_programs(1) - 1)
    def _finalize():
        o_ref[...] = (acc_ref[...] + b2_ref[...]).astype(o_ref.dtype)


def mlp_pallas(x, w1, b1, w2, b2, *, tm=256, tk=512,
               compute_dtype=jnp.bfloat16, out_dtype=None):
    """x: (B, N, C_in) -> (B, N, C_out). Tokens-major MLP with hidden K-tiling."""
    B, N, C_in = x.shape
    hid = w1.shape[1]
    C_out = w2.shape[1]
    out_dtype = out_dtype or x.dtype
    M = B * N

    # Lane-dense padding of feature dims (multiples of 128) and row padding up
    # to the (8-aligned) row tile so no masked partial stores are emitted and
    # the grid covers the array exactly (no `M % tm == 0` requirement).
    cin_p = _round_up(C_in, 128)
    cout_p = _round_up(C_out, 128)
    tk = _round_up(max(128, min(tk, _round_up(hid, 128))), 128)
    hid_p = _round_up(hid, tk)
    tm = _round_up(max(8, min(tm, _round_up(M, 8))), 8)
    m_p = _round_up(M, tm)

    cdt = jnp.dtype(compute_dtype)
    x2 = jnp.zeros((m_p, cin_p), cdt).at[:M, :C_in].set(
        x.reshape(M, C_in).astype(cdt))
    w1p = jnp.zeros((cin_p, hid_p), cdt).at[:C_in, :hid].set(w1.astype(cdt))
    w2p = jnp.zeros((hid_p, cout_p), cdt).at[:hid, :C_out].set(w2.astype(cdt))
    # Biases stay in f32 (they are added on the VPU after the f32 accumulate).
    b1p = jnp.zeros((1, hid_p), jnp.float32).at[:, :hid].set(
        b1.reshape(1, hid).astype(jnp.float32))
    b2p = jnp.zeros((1, cout_p), jnp.float32).at[:, :C_out].set(
        b2.reshape(1, C_out).astype(jnp.float32))

    grid = (m_p // tm, hid_p // tk)

    # Rough VMEM budget: double-buffered inputs + f32 accumulator + output,
    # clamped between v5e's 16 MiB scoped default and v7x's 64 MiB physical.
    cb = cdt.itemsize
    ob = jnp.dtype(out_dtype).itemsize
    est = 2 * (tm * cin_p * cb + cin_p * tk * cb + tk * 4
               + tk * cout_p * cb + cout_p * 4)
    est += tm * cout_p * 4 + 2 * tm * cout_p * ob
    vmem_limit = int(min(64 * 1024 * 1024, max(2 * est, 16 * 1024 * 1024)))

    out = pl.pallas_call(
        _mlp_kernel,
        out_shape=jax.ShapeDtypeStruct((m_p, cout_p), out_dtype),
        grid_spec=pltpu.PrefetchScalarGridSpec(
            num_scalar_prefetch=0,
            grid=grid,
            in_specs=[
                pl.BlockSpec((tm, cin_p), lambda i, k: (i, 0)),
                pl.BlockSpec((cin_p, tk), lambda i, k: (0, k)),
                pl.BlockSpec((1, tk), lambda i, k: (0, k)),
                pl.BlockSpec((tk, cout_p), lambda i, k: (k, 0)),
                pl.BlockSpec((1, cout_p), lambda i, k: (0, 0)),
            ],
            out_specs=pl.BlockSpec((tm, cout_p), lambda i, k: (i, 0)),
            scratch_shapes=[pltpu.VMEM((tm, cout_p), jnp.float32)],
        ),
        compiler_params=pltpu.CompilerParams(
            dimension_semantics=("parallel", "arbitrary"),
            vmem_limit_bytes=vmem_limit,
        ),
    )(x2, w1p, b1p, w2p, b2p)

    return out[:M, :C_out].reshape(B, N, C_out)


def _init_linear(key, fan_in, fan_out, dtype=jnp.float32):
    # Deterministic init mimicking nn.Linear defaults (kaiming-uniform bounds).
    kw, kb = jax.random.split(key)
    bound = 1.0 / math.sqrt(fan_in)
    w = jax.random.uniform(kw, (fan_in, fan_out), dtype, -bound, bound)
    b = jax.random.uniform(kb, (fan_out,), dtype, -bound, bound)
    return w, b


if __name__ == "__main__":
    key = jax.random.PRNGKey(0)
    k_x, k1, k2 = jax.random.split(key, 3)

    # Shapes consistent with the Encoder's TransformerBlock MLP:
    # img_size=8 -> N = 64 tokens, embed_dim=32, mlp_ratio=4 -> hidden=128.
    B, N = 2, 64
    in_features = 32
    hidden_features = 128
    out_features = 32

    x = jax.random.normal(k_x, (B, N, in_features), jnp.float32)
    w1, b1 = _init_linear(k1, in_features, hidden_features)
    w2, b2 = _init_linear(k2, hidden_features, out_features)

    y = mlp_pallas(x, w1, b1, w2, b2)
    y = jax.block_until_ready(y)

    # Plain-JAX f32 reference. Kernel uses bf16 MXU operands + f32 accumulate,
    # so allow ~1e-2 level deviation.
    h_ref = x.reshape(-1, in_features) @ w1 + b1
    h_ref = 0.5 * h_ref * (1.0 + lax.erf(h_ref / math.sqrt(2.0)))
    y_ref = (h_ref @ w2 + b2).reshape(B, N, out_features)
    assert y.shape == y_ref.shape
    max_err = float(jnp.max(jnp.abs(y.astype(jnp.float32) - y_ref)))
    assert jnp.allclose(y.astype(jnp.float32), y_ref, atol=2e-2, rtol=2e-2), max_err

    print("KERNEL_OK")
</pallas_src>

<mosaic_0001>
module attributes {stable_mosaic.version = 11 : i64} {
  func.func @_mlp_kernel(%arg0: i32, %arg1: i32, %arg2: memref<128x128xbf16, #tpu.memory_space<vmem>>, %arg3: memref<128x128xbf16, #tpu.memory_space<vmem>>, %arg4: memref<1x128xf32, #tpu.memory_space<vmem>>, %arg5: memref<128x128xbf16, #tpu.memory_space<vmem>>, %arg6: memref<1x128xf32, #tpu.memory_space<vmem>>, %arg7: memref<128x128xf32, #tpu.memory_space<vmem>>, %arg8: memref<128x128xf32, #tpu.memory_space<vmem>>) attributes {dimension_semantics = [#tpu.dimension_semantics<parallel>, #tpu.dimension_semantics<arbitrary>], iteration_bounds = array<i64: 1, 1>, scalar_prefetch = 0 : i64, scratch_operands = 1 : i64, tpu.core_type = #tpu.core_type<tc>, window_params = [{transform_indices = @transform_0, window_bounds = array<i64: 128, 128>}, {transform_indices = @transform_1, window_bounds = array<i64: 128, 128>}, {transform_indices = @transform_2, window_bounds = array<i64: 1, 128>}, {transform_indices = @transform_3, window_bounds = array<i64: 128, 128>}, {pipeline_mode = #tpu.pipeline_mode<synchronous>, transform_indices = @transform_4, window_bounds = array<i64: 1, 128>}, {transform_indices = @transform_5, window_bounds = array<i64: 128, 128>}]} {
    %c0_i32 = arith.constant 0 : i32
    %0 = arith.cmpi eq, %arg1, %c0_i32 : i32
    %1 = arith.extui %0 : i1 to i32
    %c0_i32_0 = arith.constant 0 : i32
    %2 = arith.cmpi ne, %1, %c0_i32_0 : i32
    scf.if %2 {
      %cst_18 = arith.constant 0.000000e+00 : f32
      %26 = vector.broadcast %cst_18 : f32 to vector<128x128xf32>
      %c0_19 = arith.constant 0 : index
      %c0_20 = arith.constant 0 : index
      %27 = vector.load %arg8[%c0_19, %c0_20] : memref<128x128xf32, #tpu.memory_space<vmem>>, vector<128x128xf32>
      tpu.vector_store %arg8[%c0_19, %c0_20], %26 {strides = array<i32>} : memref<128x128xf32, #tpu.memory_space<vmem>>, vector<128x128xf32>,
    } else {
    }
    %c0 = arith.constant 0 : index
    %c0_1 = arith.constant 0 : index
    %3 = vector.load %arg2[%c0, %c0_1] : memref<128x128xbf16, #tpu.memory_space<vmem>>, vector<128x128xbf16>
    %c0_2 = arith.constant 0 : index
    %c0_3 = arith.constant 0 : index
    %4 = vector.load %arg3[%c0_2, %c0_3] : memref<128x128xbf16, #tpu.memory_space<vmem>>, vector<128x128xbf16>
    %cst = arith.constant dense<0.000000e+00> : vector<128x128xf32>
    %5 = tpu.matmul %3, %4, %cst {dimension_numbers = #tpu.dot_dimension_numbers<[1], [0], [0], [1], [0, 0, 1, 1], [], []>} : vector<128x128xbf16>, vector<128x128xbf16>, vector<128x128xf32> -> vector<128x128xf32>
    %c0_4 = arith.constant 0 : index
    %c0_5 = arith.constant 0 : index
    %6 = vector.load %arg4[%c0_4, %c0_5] : memref<1x128xf32, #tpu.memory_space<vmem>>, vector<1x128xf32>
    %7 = vector.broadcast %6 : vector<1x128xf32> to vector<128x128xf32>
    %8 = arith.addf %5, %7 : vector<128x128xf32>
    %cst_6 = arith.constant 5.000000e-01 : f32
    %9 = vector.broadcast %cst_6 : f32 to vector<128x128xf32>
    %10 = arith.mulf %9, %8 : vector<128x128xf32>
    %cst_7 = arith.constant 0.707106769 : f32
    %11 = vector.broadcast %cst_7 : f32 to vector<128x128xf32>
    %12 = arith.mulf %8, %11 : vector<128x128xf32>
    %13 = math.erf %12 : vector<128x128xf32>
    %cst_8 = arith.constant 1.000000e+00 : f32
    %14 = vector.broadcast %cst_8 : f32 to vector<128x128xf32>
    %15 = arith.addf %14, %13 : vector<128x128xf32>
    %16 = arith.mulf %10, %15 : vector<128x128xf32>
    %c0_9 = arith.constant 0 : index
    %c0_10 = arith.constant 0 : index
    %17 = vector.load %arg8[%c0_9, %c0_10] : memref<128x128xf32, #tpu.memory_space<vmem>>, vector<128x128xf32>
    %18 = arith.truncf %16 : vector<128x128xf32> to vector<128x128xbf16>
    %c0_11 = arith.constant 0 : index
    %c0_12 = arith.constant 0 : index
    %19 = vector.load %arg5[%c0_11, %c0_12] : memref<128x128xbf16, #tpu.memory_space<vmem>>, vector<128x128xbf16>
    %cst_13 = arith.constant dense<0.000000e+00> : vector<128x128xf32>
    %20 = tpu.matmul %18, %19, %cst_13 {dimension_numbers = #tpu.dot_dimension_numbers<[1], [0], [0], [1], [0, 0, 1, 1], [], []>} : vector<128x128xbf16>, vector<128x128xbf16>, vector<128x128xf32> -> vector<128x128xf32>
    %21 = arith.addf %17, %20 : vector<128x128xf32>
    %c0_14 = arith.constant 0 : index
    %c0_15 = arith.constant 0 : index
    %22 = vector.load %arg8[%c0_14, %c0_15] : memref<128x128xf32, #tpu.memory_space<vmem>>, vector<128x128xf32>
    tpu.vector_store %arg8[%c0_14, %c0_15], %21 {strides = array<i32>} : memref<128x128xf32, #tpu.memory_space<vmem>>, vector<128x128xf32>,
    %c0_i32_16 = arith.constant 0 : i32
    %23 = arith.cmpi eq, %arg1, %c0_i32_16 : i32
    %24 = arith.extui %23 : i1 to i32
    %c0_i32_17 = arith.constant 0 : i32
    %25 = arith.cmpi ne, %24, %c0_i32_17 : i32
    scf.if %25 {
      %c0_18 = arith.constant 0 : index
      %c0_19 = arith.constant 0 : index
      %26 = vector.load %arg8[%c0_18, %c0_19] : memref<128x128xf32, #tpu.memory_space<vmem>>, vector<128x128xf32>
      %c0_20 = arith.constant 0 : index
      %c0_21 = arith.constant 0 : index
      %27 = vector.load %arg6[%c0_20, %c0_21] : memref<1x128xf32, #tpu.memory_space<vmem>>, vector<1x128xf32>
      %28 = vector.broadcast %27 : vector<1x128xf32> to vector<128x128xf32>
      %29 = arith.addf %26, %28 : vector<128x128xf32>
      %c0_22 = arith.constant 0 : index
      %c0_23 = arith.constant 0 : index
      %30 = vector.load %arg7[%c0_22, %c0_23] : memref<128x128xf32, #tpu.memory_space<vmem>>, vector<128x128xf32>
      tpu.vector_store %arg7[%c0_22, %c0_23], %29 {strides = array<i32>} : memref<128x128xf32, #tpu.memory_space<vmem>>, vector<128x128xf32>,
    } else {
    }
    return
  }
  func.func @transform_0(%arg0: i32, %arg1: i32) -> (i32, i32) {
    %c0_i32 = arith.constant 0 : i32
    %c0_i32_0 = arith.constant 0 : i32
    return %arg0, %c0_i32 : i32, i32
  }
  func.func @transform_1(%arg0: i32, %arg1: i32) -> (i32, i32) {
    %c0_i32 = arith.constant 0 : i32
    %c0_i32_0 = arith.constant 0 : i32
    return %c0_i32, %arg1 : i32, i32
  }
  func.func @transform_2(%arg0: i32, %arg1: i32) -> (i32, i32) {
    %c0_i32 = arith.constant 0 : i32
    %c0_i32_0 = arith.constant 0 : i32
    return %c0_i32, %arg1 : i32, i32
  }
  func.func @transform_3(%arg0: i32, %arg1: i32) -> (i32, i32) {
    %c0_i32 = arith.constant 0 : i32
    %c0_i32_0 = arith.constant 0 : i32
    return %arg1, %c0_i32 : i32, i32
  }
  func.func @transform_4(%arg0: i32, %arg1: i32) -> (i32, i32) {
    %c0_i32 = arith.constant 0 : i32
    %c0_i32_0 = arith.constant 0 : i32
    %c0_i32_1 = arith.constant 0 : i32
    return %c0_i32, %c0_i32_0 : i32, i32
  }
  func.func @transform_5(%arg0: i32, %arg1: i32) -> (i32, i32) {
    %c0_i32 = arith.constant 0 : i32
    %c0_i32_0 = arith.constant 0 : i32
    return %arg0, %c0_i32 : i32, i32
  }
}

</mosaic_0001>

<bundles_post_ra>
// kernel: tpu_custom_call.1
= control target key start
LH: loop header
LB: loop body
LE: loop exit
PB: predicated region body
PF: predicated region fallthrough
CT: control target
= control target key end

     0   :  { %10 = vsyncpa [#allocation4], 0  ;;  %s1066_s0 = inlined_call_operand.hbm [shape: bf16[128,128], index: 0, kind: input, shape index: {}]   ;;  %s1067_s1 = inlined_call_operand.hbm [shape: bf16[128,128], index: 1, kind: input, shape index: {}]   ;;  %s1068_s2 = inlined_call_operand.vmem [shape: f32[1,128], index: 2, kind: input, shape index: {}]   ;;  %s1069_s3 = inlined_call_operand.hbm [shape: bf16[128,128], index: 3, kind: input, shape index: {}]   ;;  %s1070_s4 = inlined_call_operand.vmem [shape: f32[1,128], index: 4, kind: input, shape index: {}]   ;;  %s1071_s5 = inlined_call_operand.hbm [shape: f32[128,128], index: 5, kind: output, shape index: {}]  }
   0x1   :  { %11 = vsyncpa [#allocation7], 0 }
   0x2   :  { %12 = vsyncpa [#allocation5], 0  ;;  %s960_s18 = smov [#allocation6]   ;;  %s961_s20 = smov [#allocation3]  }
   0x3   :  { %s30_s19 = sshll.u32 %s960_s18, 4  ;;  %s18_s21 = sshll.u32 %s961_s20, 4  ;;  %s31_s19 = int_to_ptr.vmem [resolvable:$true] %s30_s19  ;;  %s19_s21 = int_to_ptr.vmem [resolvable:$true] %s18_s21 }
   0x4   :  { %s882_s22 = scalar_lea.vmem %s31_s19, 1024  ;;  %p887_p1 = scmp.lt.s32.totalorder %s31_s19, %s31_s19 }
   0x5   :  { %p883_p0 = scmp.ne.s32.totalorder %s31_s19, %s882_s22  ;;  %p888_p2 = scmp.lt.s32.totalorder %s882_s22, %s882_s22 }
   0x7   :  { %p889_p3 = por %p888_p2, %p887_p1 }
   0x9   :  { %p890_p4 = pnand %p889_p3, %p883_p0 }
   0xb   :  { %893 = shalt.err (!%p890_p4)
}
   0xc   :  { %s962_s23 = smov 64   ;;  %s963_s24 = smov 4  }
   0xd   :  { %36 = dma.hbm_to_vmem [thread:$0]  %s1067_s1, 1024, %s31_s19, [#allocation7], %s962_s23, %s962_s23, %s963_s24  }
   0xe   :  { %s902_s27 = scalar_lea.vmem %s19_s21, 1024  ;;  %p907_p6 = scmp.lt.s32.totalorder %s19_s21, %s19_s21 }
   0xf   :  { %p903_p5 = scmp.ne.s32.totalorder %s19_s21, %s902_s27  ;;  %p908_p7 = scmp.lt.s32.totalorder %s902_s27, %s902_s27 }
  0x11   :  { %p909_p8 = por %p908_p7, %p907_p6 }
  0x13   :  { %p910_p9 = pnand %p909_p8, %p903_p5 }
  0x15   :  { %913 = shalt.err (!%p910_p9)
}
  0x16   :  { %24 = dma.hbm_to_vmem [thread:$0]  %s1066_s0, 1024, %s19_s21, [#allocation4], %s962_s23, %s962_s23, %s963_s24  }
  0x17   :  { %s964_s30 = smov [#allocation8]  }
  0x18   :  { %s44_s6 = sshll.u32 %s964_s30, 4  ;;  %s45_s6 = int_to_ptr.vmem [resolvable:$true] %s44_s6 }
  0x19   :  { %s922_s7 = scalar_lea.vmem %s45_s6, 1024  ;;  %p927_p11 = scmp.lt.s32.totalorder %s45_s6, %s45_s6 }
  0x1a   :  { %p923_p10 = scmp.ne.s32.totalorder %s45_s6, %s922_s7  ;;  %p928_p12 = scmp.lt.s32.totalorder %s922_s7, %s922_s7 }
  0x1c   :  { %p929_p13 = por %p928_p12, %p927_p11 }
  0x1e   :  { %p930_p0 = pnand %p929_p13, %p923_p10 }
  0x20   :  { %933 = shalt.err (!%p930_p0)
}
  0x21   :  { %50 = dma.hbm_to_vmem [thread:$0]  %s1069_s3, 1024, %s45_s6, [#allocation7], %s962_s23, %s962_s23, %s963_s24  }
  0x22   :  { %954 = dma.done.wait [#allocation4], 1024  }
  0x23   :  { %955 = vsyncadd [#allocation4], 4294966272 }
  0x24   :  { %956 = dma.done.wait [#allocation7], 2048  }
  0x25   :  { %957 = vsyncadd [#allocation7], 4294965248  ;;  %v818_v0 = vld [vmem:[#allocation6 + $0x38] sm:$0xff]   ;;  %v819_v1 = vld [vmem:[#allocation6 + $0x30] sm:$0xff]  }
  0x26   :  { %746 = vmatprep.subr.bf16.mxu0 %v818_v0  ;;  %v820_v2 = vld [vmem:[#allocation6 + $0x28] sm:$0xff]   ;;  %v821_v3 = vld [vmem:[#allocation6 + $0x20] sm:$0xff]   ;;  %v822_v5 = vld [vmem:[#allocation6 + $0x18] sm:$0xff]  }
  0x27   :  { %747 = vmatpush3.bf16.msra.mxu0 %v818_v0  ;;  %v826_v4 = vld [vmem:[#allocation3] sm:$0xff]   ;;  %v823_v6 = vld [vmem:[#allocation6 + $0x10] sm:$0xff]   ;;  %v824_v7 = vld [vmem:[#allocation6 + $0x8] sm:$0xff]  }
  0x28   :  { %748 = vmatprep.subr.bf16.mxu0 %v819_v1  ;;  %762 = vmatprep.mubr.bf16.mxu0 %v826_v4  ;;  %v825_v8 = vld [vmem:[#allocation6] sm:$0xff]   ;;  %v827_v9 = vld [vmem:[#allocation3 + $0x8] sm:$0xff]   ;;  %v828_v10 = vld [vmem:[#allocation3 + $0x10] sm:$0xff]  }
  0x29   :  { %v829_v11 = vld [vmem:[#allocation3 + $0x18] sm:$0xff]   ;;  %v830_v12 = vld [vmem:[#allocation3 + $0x20] sm:$0xff]   ;;  %v831_v13 = vld [vmem:[#allocation3 + $0x28] sm:$0xff]  }
  0x2a   :  { %v832_v14 = vld [vmem:[#allocation3 + $0x30] sm:$0xff]   ;;  %v833_v15 = vld [vmem:[#allocation3 + $0x38] sm:$0xff]   ;;  %v836_v18 = vld [vmem:[#allocation8 + $0x28] sm:$0xff]  }
  0x2b   :  { %749 = vmatpush3.bf16.msra.mxu0 %v819_v1  ;;  %v834_v16 = vld [vmem:[#allocation8 + $0x38] sm:$0xff]   ;;  %v835_v17 = vld [vmem:[#allocation8 + $0x30] sm:$0xff]   ;;  %v837_v19 = vld [vmem:[#allocation8 + $0x20] sm:$0xff]  }
  0x2c   :  { %750 = vmatprep.subr.bf16.mxu0 %v820_v2  ;;  %778 = vmatprep.subr.bf16.mxu1 %v834_v16  ;;  %v838_v20 = vld [vmem:[#allocation8 + $0x18] sm:$0xff]   ;;  %v839_v21 = vld [vmem:[#allocation8 + $0x10] sm:$0xff]   ;;  %v840_v22 = vld [vmem:[#allocation8 + $0x8] sm:$0xff]  }
  0x2d   :  { %779 = vmatpush3.bf16.msra.mxu1 %v834_v16  ;;  %v841_v23 = vld [vmem:[#allocation8] sm:$0xff]  }
  0x2e   :  { %780 = vmatprep.subr.bf16.mxu1 %v835_v17  ;;  %v1010_v24 = vld [vmem:[%s1068_s2] ss:$0 sm:$0xff] }
  0x2f   :  { %751 = vmatpush3.bf16.msra.mxu0 %v820_v2 }
  0x30   :  { %752 = vmatprep.subr.bf16.mxu0 %v821_v3 }
  0x31   :  { %781 = vmatpush3.bf16.msra.mxu1 %v835_v17 }
  0x32   :  { %782 = vmatprep.subr.bf16.mxu1 %v836_v18 }
  0x33   :  { %753 = vmatpush3.bf16.msra.mxu0 %v821_v3 }
  0x34   :  { %754 = vmatprep.subr.bf16.mxu0 %v822_v5 }
  0x35   :  { %783 = vmatpush3.bf16.msra.mxu1 %v836_v18 }
  0x36   :  { %784 = vmatprep.subr.bf16.mxu1 %v837_v19 }
  0x37   :  { %755 = vmatpush3.bf16.msra.mxu0 %v822_v5 }
  0x38   :  { %756 = vmatprep.subr.bf16.mxu0 %v823_v6 }
  0x39   :  { %785 = vmatpush3.bf16.msra.mxu1 %v837_v19 }
  0x3a   :  { %786 = vmatprep.subr.bf16.mxu1 %v838_v20 }
  0x3b   :  { %757 = vmatpush3.bf16.msra.mxu0 %v823_v6 }
  0x3c   :  { %758 = vmatprep.subr.bf16.mxu0 %v824_v7 }
  0x3d   :  { %787 = vmatpush3.bf16.msra.mxu1 %v838_v20 }
  0x3e   :  { %788 = vmatprep.subr.bf16.mxu1 %v839_v21 }
  0x3f   :  { %759 = vmatpush3.bf16.msra.mxu0 %v824_v7 }
  0x40   :  { %760 = vmatprep.subr.bf16.mxu0 %v825_v8 }
  0x41   :  { %789 = vmatpush3.bf16.msra.mxu1 %v839_v21 }
  0x42   :  { %790 = vmatprep.subr.bf16.mxu1 %v840_v22 }
  0x43   :  { %761 = vmatpush3.bf16.msra.mxu0 %v825_v8 }
  0x45   :  { %791 = vmatpush3.bf16.msra.mxu1 %v840_v22 }
  0x46   :  { %763 = vmatmul.mubr.bf16.vlgmr.msra.gmra.mxu0 %v827_v9  ;;  %792 = vmatprep.subr.bf16.mxu1 %v841_v23 }
  0x47   :  { %766 = vmatprep.mubr.bf16.mxu0 %v828_v10 }
  0x49   :  { %793 = vmatpush3.bf16.msra.mxu1 %v841_v23 }
  0x4e   :  { %767 = vmatmul.mubr.bf16.gmra.mxu0 %v829_v11 }
  0x4f   :  { %770 = vmatprep.mubr.bf16.mxu0 %v830_v12 }
  0x56   :  { %771 = vmatmul.mubr.bf16.gmra.mxu0 %v831_v13 }
  0x57   :  { %774 = vmatprep.mubr.bf16.mxu0 %v832_v14 }
  0x5e   :  { %775 = vmatmul.mubr.bf16.gmra.mxu0 %v833_v15 }
 0x106   :  { %v764_v25 = vpop.f32.mrf.mxu0 }
 0x107   :  { %v261_v26 = vadd.f32 %v764_v25, %v1010_v24 }
 0x108   :  { %v252_v27 = vpop.f32.mrf.mxu0 }
 0x109   :  { %v333_v28 = vmul.f32 0.70710677, %v261_v26  ;;  %v253_v29 = vadd.f32 %v1010_v24, %v252_v27  ;;  %v317_v5 = vmul.f32 0.5, %v261_v26 }
 0x10a   :  { %v765_v30 = vpop.f32.mrf.mxu0 }
 0x10b   :  { %v331_v31 = vmul.f32 0.70710677, %v253_v29  ;;  %v264_v32 = vadd.f32 %v765_v30, %v1010_v24  ;;  %842 = verf.f32 %v333_v28  ;;  %v315_v6 = vmul.f32 0.5, %v253_v29 }
 0x10c   :  { %v255_v33 = vpop.f32.mrf.mxu0 }
 0x10d   :  { %v334_v34 = vmul.f32 0.70710677, %v264_v32  ;;  %v256_v35 = vadd.f32 %v1010_v24, %v255_v33  ;;  %844 = verf.f32 %v331_v31  ;;  %v318_v2 = vmul.f32 0.5, %v264_v32 }
 0x10e   :  { %v768_v36 = vpop.f32.mrf.mxu0 }
 0x10f   :  { %846 = verf.f32 %v334_v34  ;;  %v332_v37 = vmul.f32 0.70710677, %v256_v35  ;;  %v1017_v38 = vadd.f32 %v768_v36, %v1010_v24  ;;  %v316_v9 = vmul.f32 0.5, %v256_v35 }
 0x110   :  { %v268_v39 = vpop.f32.mrf.mxu0 }
 0x111   :  { %848 = verf.f32 %v332_v37  ;;  %v1020_v40 = vadd.f32 %v1010_v24, %v268_v39  ;;  %v337_v41 = vmul.f32 0.70710677, %v1017_v38 }
 0x112   :  { %v769_v42 = vpop.f32.mrf.mxu0 }
 0x113   :  { %v335_v43 = vmul.f32 0.70710677, %v1020_v40  ;;  %v280_v44 = vadd.f32 %v769_v42, %v1010_v24  ;;  %v319_v32 = vmul.f32 0.5, %v1020_v40 }
 0x114   :  { %v271_v45 = vpop.f32.mrf.mxu0 }
 0x115   :  { %850 = verf.f32 %v335_v43  ;;  %v338_v46 = vmul.f32 0.70710677, %v280_v44  ;;  %v272_v47 = vadd.f32 %v1010_v24, %v271_v45  ;;  %v322_v33 = vmul.f32 0.5, %v280_v44 }
 0x116   :  { %852 = verf.f32 %v337_v41  ;;  %v772_v48 = vpop.f32.mrf.mxu0  ;;  %v321_v41 = vmul.f32 0.5, %v1017_v38 }
 0x117   :  { %854 = verf.f32 %v338_v46  ;;  %v336_v49 = vmul.f32 0.70710677, %v272_v47  ;;  %v1027_v50 = vadd.f32 %v772_v48, %v1010_v24  ;;  %v320_v34 = vmul.f32 0.5, %v272_v47 }
 0x118   :  { %v284_v51 = vpop.f32.mrf.mxu0  ;;  %v843_v53 = vpop.eup %842 }
 0x119   :  { %856 = verf.f32 %v336_v49  ;;  %v341_v52 = vmul.f32 0.70710677, %v1027_v50  ;;  %v1031_v54 = vadd.f32 %v1010_v24, %v284_v51  ;;  %v365_v1 = vadd.f32 1.0, %v843_v53 }
 0x11a   :  { %v773_v55 = vpop.f32.mrf.mxu0  ;;  %v845_v56 = vpop.eup %844 }
 0x11b   :  { %v1034_v57 = vadd.f32 %v773_v55, %v1010_v24  ;;  %v339_v59 = vmul.f32 0.70710677, %v1031_v54  ;;  %858 = verf.f32 %v341_v52  ;;  %v363_v4 = vadd.f32 1.0, %v845_v56 }
 0x11c   :  { %v847_v58 = vpop.eup %846  ;;  %v287_v60 = vpop.f32.mrf.mxu0  ;;  %v381_v15 = vmul.f32 %v365_v1, %v317_v5  ;;  %v323_v53 = vmul.f32 0.5, %v1031_v54 }
 0x11d   :  { %v366_v61 = vadd.f32 1.0, %v847_v58  ;;  %v342_v62 = vmul.f32 0.70710677, %v1034_v57  ;;  %v1039_v63 = vadd.f32 %v1010_v24, %v287_v60  ;;  %860 = verf.f32 %v339_v59 }
 0x11e   :  { %v849_v0 = vpop.eup %848  ;;  %v776_v3 = vpop.f32.mrf.mxu0  ;;  %v379_v17 = vmul.f32 %v363_v4, %v315_v6  ;;  %v326_v38 = vmul.f32 0.5, %v1034_v57  ;;  %v325_v59 = vmul.f32 0.5, %v1027_v50 }
 0x11f   :  { %862 = verf.f32 %v342_v62  ;;  %v340_v7 = vmul.f32 0.70710677, %v1039_v63  ;;  %v382_v8 = vmul.f32 %v366_v61, %v318_v2  ;;  %v1043_v10 = vadd.f32 %v776_v3, %v1010_v24 }
 0x120   :  { %v300_v11 = vpop.f32.mrf.mxu0  ;;  %v364_v12 = vadd.f32 1.0, %v849_v0  ;;  %v324_v56 = vmul.f32 0.5, %v1039_v63 }
 0x121   :  { %864 = verf.f32 %v340_v7  ;;  %v1046_v13 = vadd.f32 %v1010_v24, %v300_v11  ;;  %v345_v20 = vmul.f32 0.70710677, %v1043_v10  ;;  %v412_v27 = vpack.c.bf16 %v382_v8, %v381_v15 }
 0x122   :  { %v851_v14 = vpop.eup %850  ;;  %v777_v16 = vpop.f32.mrf.mxu0  ;;  %v380_v18 = vmul.f32 %v364_v12, %v316_v9  ;;  %v329_v50 = vmul.f32 0.5, %v1043_v10 }
 0x123   :  { %v853_v19 = vpop.eup %852  ;;  %v343_v21 = vmul.f32 0.70710677, %v1046_v13  ;;  %v312_v23 = vadd.f32 %v777_v16, %v1010_v24  ;;  %v367_v28 = vadd.f32 1.0, %v851_v14  ;;  %v327_v57 = vmul.f32 0.5, %v1046_v13  ;;  %v713_v13 = vld [vmem:[%s1070_s4] ss:$0 sm:$0xff] }
 0x124   :  { %v855_v22 = vpop.eup %854  ;;  %v303_v25 = vpop.f32.mrf.mxu0  ;;  %v411_v26 = vpack.c.bf16 %v380_v18, %v379_v17  ;;  %v369_v36 = vadd.f32 1.0, %v853_v19  ;;  %s965_s4 = smov [#allocation9]  }
 0x125   :  { %v370_v29 = vadd.f32 1.0, %v855_v22  ;;  %866 = verf.f32 %v343_v21  ;;  %v304_v30 = vadd.f32 %v1010_v24, %v303_v25  ;;  %v346_v35 = vmul.f32 0.70710677, %v312_v23  ;;  %s675_s10 = sshll.u32 %s965_s4, 4  ;;  %s676_s10 = int_to_ptr.vmem [resolvable:$true] %s675_s10 }
 0x126   :  { %v857_v31 = vpop.eup %856  ;;  %794 = vmatprep.mubr.bf16.mxu1 %v411_v26  ;;  %868 = verf.f32 %v345_v20  ;;  %v383_v42 = vmul.f32 %v367_v28, %v319_v32  ;;  %v385_v48 = vmul.f32 %v369_v36, %v321_v41  ;;  %v330_v8 = vmul.f32 0.5, %v312_v23  ;;  %s934_s11 = scalar_lea.vmem %s676_s10, 2048  ;;  %p939_p2 = scmp.lt.s32.totalorder %s676_s10, %s676_s10 }
 0x127   :  { %v368_v37 = vadd.f32 1.0, %v857_v31  ;;  %v344_v39 = vmul.f32 0.70710677, %v304_v30  ;;  %795 = vmatmul.mubr.bf16.vlgmr.msra.gmra.mxu1 %v412_v27  ;;  %870 = verf.f32 %v346_v35  ;;  %v386_v43 = vmul.f32 %v370_v29, %v322_v33  ;;  %p935_p1 = scmp.ne.s32.totalorder %s676_s10, %s934_s11  ;;  %p940_p3 = scmp.lt.s32.totalorder %s934_s11, %s934_s11 }
 0x128   :  { %v859_v24 = vpop.eup %858  ;;  %v328_v9 = vmul.f32 0.5, %v304_v30 }
 0x129   :  { %v384_v45 = vmul.f32 %v368_v37, %v320_v34  ;;  %872 = verf.f32 %v344_v39  ;;  %v414_v51 = vpack.c.bf16 %v386_v43, %v385_v48  ;;  %v373_v55 = vadd.f32 1.0, %v859_v24  ;;  %p941_p4 = por %p940_p3, %p939_p2 }
 0x12a   :  { %v861_v46 = vpop.eup %860 }
 0x12b   :  { %v413_v40 = vpack.c.bf16 %v384_v45, %v383_v42  ;;  %v371_v47 = vadd.f32 1.0, %v861_v46  ;;  %v389_v1 = vmul.f32 %v373_v55, %v325_v59  ;;  %p942_p5 = pnand %p941_p4, %p935_p1 }
 0x12c   :  { %v863_v44 = vpop.eup %862 }
 0x12d   :  { %v374_v49 = vadd.f32 1.0, %v863_v44  ;;  %798 = vmatprep.mubr.bf16.mxu1 %v413_v40  ;;  %v387_v60 = vmul.f32 %v371_v47, %v323_v53 }
 0x12e   :  { %v865_v52 = vpop.eup %864 }
 0x12f   :  { %v372_v58 = vadd.f32 1.0, %v865_v52  ;;  %799 = vmatmul.mubr.bf16.gmra.mxu1 %v414_v51  ;;  %v390_v61 = vmul.f32 %v374_v49, %v326_v38 }
 0x131   :  { %v388_v62 = vmul.f32 %v372_v58, %v324_v56  ;;  %v416_v54 = vpack.c.bf16 %v390_v61, %v389_v1 }
 0x132   :  { %v867_v0 = vpop.eup %866 }
 0x133   :  { %v415_v2 = vpack.c.bf16 %v388_v62, %v387_v60  ;;  %v869_v3 = vpop.eup %868  ;;  %v375_v5 = vadd.f32 1.0, %v867_v0 }
 0x134   :  { %v871_v4 = vpop.eup %870  ;;  %v377_v63 = vadd.f32 1.0, %v869_v3 }
 0x135   :  { %802 = vmatprep.mubr.bf16.mxu1 %v415_v2  ;;  %v378_v7 = vadd.f32 1.0, %v871_v4  ;;  %v391_v12 = vmul.f32 %v375_v5, %v327_v57 }
 0x136   :  { %v873_v6 = vpop.eup %872  ;;  %v393_v16 = vmul.f32 %v377_v63, %v329_v50 }
 0x137   :  { %v376_v11 = vadd.f32 1.0, %v873_v6  ;;  %803 = vmatmul.mubr.bf16.gmra.mxu1 %v416_v54  ;;  %v394_v14 = vmul.f32 %v378_v7, %v330_v8 }
 0x139   :  { %v392_v15 = vmul.f32 %v376_v11, %v328_v9  ;;  %v418_v18 = vpack.c.bf16 %v394_v14, %v393_v16 }
 0x13b   :  { %v417_v17 = vpack.c.bf16 %v392_v15, %v391_v12 }
 0x13d   :  { %806 = vmatprep.mubr.bf16.mxu1 %v417_v17 }
 0x13f   :  { %807 = vmatmul.mubr.bf16.gmra.mxu1 %v418_v18 }
 0x1e7   :  { %v796_v19 = vpop.f32.mrf.mxu1 }
 0x1e8   :  { %v640_v20 = vadd.f32 %v796_v19, %v713_v13 }
 0x1e9   :  { %v517_v21 = vpop.f32.mrf.mxu1 }
 0x1ea   :  { %656 = vst [vmem:[#allocation9 + $0x10] sm:$0xff] %v640_v20  ;;  %v638_v22 = vadd.f32 %v713_v13, %v517_v21 }
 0x1eb   :  { %v797_v23 = vpop.f32.mrf.mxu1 }
 0x1ec   :  { %654 = vst [vmem:[#allocation9] sm:$0xff] %v638_v22  ;;  %v641_v10 = vadd.f32 %v797_v23, %v713_v13 }
 0x1ed   :  { %v520_v25 = vpop.f32.mrf.mxu1 }
 0x1ee   :  { %657 = vst [vmem:[#allocation9 + $0x18] sm:$0xff] %v641_v10  ;;  %v639_v26 = vadd.f32 %v713_v13, %v520_v25 }
 0x1ef   :  { %v800_v27 = vpop.f32.mrf.mxu1 }
 0x1f0   :  { %655 = vst [vmem:[#allocation9 + $0x8] sm:$0xff] %v639_v26  ;;  %v644_v28 = vadd.f32 %v800_v27, %v713_v13 }
 0x1f1   :  { %v533_v29 = vpop.f32.mrf.mxu1 }
 0x1f2   :  { %660 = vst [vmem:[#allocation9 + $0x30] sm:$0xff] %v644_v28  ;;  %v642_v30 = vadd.f32 %v713_v13, %v533_v29 }
 0x1f3   :  { %v801_v31 = vpop.f32.mrf.mxu1 }
 0x1f4   :  { %658 = vst [vmem:[#allocation9 + $0x20] sm:$0xff] %v642_v30  ;;  %v645_v32 = vadd.f32 %v801_v31, %v713_v13 }
 0x1f5   :  { %v536_v33 = vpop.f32.mrf.mxu1 }
 0x1f6   :  { %661 = vst [vmem:[#allocation9 + $0x38] sm:$0xff] %v645_v32  ;;  %v643_v34 = vadd.f32 %v713_v13, %v536_v33 }
 0x1f7   :  { %v804_v35 = vpop.f32.mrf.mxu1 }
 0x1f8   :  { %659 = vst [vmem:[#allocation9 + $0x28] sm:$0xff] %v643_v34  ;;  %v648_v36 = vadd.f32 %v804_v35, %v713_v13 }
 0x1f9   :  { %v549_v37 = vpop.f32.mrf.mxu1 }
 0x1fa   :  { %664 = vst [vmem:[#allocation9 + $0x50] sm:$0xff] %v648_v36  ;;  %v646_v39 = vadd.f32 %v713_v13, %v549_v37 }
 0x1fb   :  { %v805_v41 = vpop.f32.mrf.mxu1 }
 0x1fc   :  { %662 = vst [vmem:[#allocation9 + $0x40] sm:$0xff] %v646_v39  ;;  %v649_v42 = vadd.f32 %v805_v41, %v713_v13 }
 0x1fd   :  { %v552_v43 = vpop.f32.mrf.mxu1 }
 0x1fe   :  { %665 = vst [vmem:[#allocation9 + $0x58] sm:$0xff] %v649_v42  ;;  %v647_v45 = vadd.f32 %v713_v13, %v552_v43 }
 0x1ff   :  { %v808_v24 = vpop.f32.mrf.mxu1 }
 0x200   :  { %663 = vst [vmem:[#allocation9 + $0x48] sm:$0xff] %v647_v45  ;;  %v652_v46 = vadd.f32 %v808_v24, %v713_v13 }
 0x201   :  { %v565_v48 = vpop.f32.mrf.mxu1 }
 0x202   :  { %668 = vst [vmem:[#allocation9 + $0x70] sm:$0xff] %v652_v46  ;;  %v650_v40 = vadd.f32 %v713_v13, %v565_v48 }
 0x203   :  { %v809_v44 = vpop.f32.mrf.mxu1 }
 0x204   :  { %666 = vst [vmem:[#allocation9 + $0x60] sm:$0xff] %v650_v40  ;;  %v653_v47 = vadd.f32 %v809_v44, %v713_v13 }
 0x205   :  { %v568_v49 = vpop.f32.mrf.mxu1 }
 0x206   :  { %669 = vst [vmem:[#allocation9 + $0x78] sm:$0xff] %v653_v47  ;;  %v651_v51 = vadd.f32 %v713_v13, %v568_v49 }
 0x208   :  { %667 = vst [vmem:[#allocation9 + $0x68] sm:$0xff] %v651_v51 }
 0x209   :  { %945 = shalt.err (!%p942_p5)
}
 0x20a   :  { %s966_s12 = smov 128   ;;  %s967_s13 = smov 8  }
 0x20b   :  { %681 = dma.vmem_to_hbm [thread:$0]  %s676_s10, 2048, %s1071_s5, [#allocation5], %s966_s12, %s966_s12, %s967_s13  }
 0x20c   :  { %958 = dma.done.wait [#allocation5], 2048  }
 0x20d   :  { %959 = vsyncadd [#allocation5], 4294965248 }
 0x20e   :  { %685 = vsyncpa [#allocation4], 1 }
 0x20f   :  { %686 = vsyncpa [#allocation7], 1 }
 0x210   :  { %687 = vsyncpa [#allocation5], 1 }

</bundles_post_ra>
